<compile_context>
chip_gen: v5e
topology: v5e:2x2
jax: 0.10.0
libtpu: 0.0.40
codegen_flags: <defaults>
</compile_context>

<pallas_src>
import jax
import jax.numpy as jnp
from jax.experimental import pallas as pl
from jax.experimental.pallas import tpu as pltpu


def _round_up(x, m):
    return ((x + m - 1) // m) * m


def patch_embed_kernel(x_ref, w_ref, b_ref, o_ref):
    # x_ref: (tm, Kp)  bf16 patch rows (B and N folded into M; K zero-padded)
    # w_ref: (Kp, tn)  bf16 projection tile (grid-constant when tn == Ep)
    # b_ref: (1,  tn)  f32 bias row
    # o_ref: (tm, tn)  output tile
    acc = jnp.dot(x_ref[...], w_ref[...],
                  preferred_element_type=jnp.float32)      # MXU, f32 accumulate
    o_ref[...] = (acc + b_ref[...]).astype(o_ref.dtype)


def patch_embed(x, weight, bias, patch_size, *, out_dtype=None,
                tm_cap=512, vmem_budget_bytes=24 << 20):
    """ViT patch embedding.

    x: (B, C, H, W); weight: (E, C, p, p); bias: (E,).
    Returns (B, N_patches, E), identical to the PyTorch
    conv2d(x, stride=p).flatten(2).transpose(1, 2).
    """
    B, C, H, W = x.shape
    E = weight.shape[0]
    p = patch_size
    nh, nw = H // p, W // p
    N = nh * nw
    K = C * p * p
    M = B * N
    if out_dtype is None:
        out_dtype = x.dtype
    out_bytes = jnp.dtype(out_dtype).itemsize

    Kp = _round_up(K, 128)   # lane-align K (exact: zero pad both operands)
    Ep = _round_up(E, 128)   # lane-dense output (unmasked vst)

    # --- glue (XLA): cast -> patchify -> pad, one fused half-width pass ----
    # (B, C, H, W) -> (B, nh, nw, C, p, p) -> (M, K); flattening order of
    # (C, p, p) matches the conv-weight flattening below, so this is exactly
    # the strided conv.
    # TODO(synk): fuse the patch gather into the kernel (pl.ANY x + manual
    # strided make_async_copy, double-buffered) to drop this HBM round-trip.
    xb = x.astype(jnp.bfloat16)
    patches = xb.reshape(B, C, nh, p, nw, p)
    patches = patches.transpose(0, 2, 4, 1, 3, 5).reshape(M, K)

    w_mat = weight.astype(jnp.bfloat16).reshape(E, K).T      # (K, E) bf16
    b_row = bias.reshape(1, E).astype(jnp.float32)           # (1, E) f32

    # --- tile selection against an explicit VMEM budget (v7x: 64 MiB) ------
    def vmem_bytes(tm, tn, w_bufs):
        return (2 * tm * Kp * 2              # x tile   (double-buffered, bf16)
                + w_bufs * Kp * tn * 2       # weight   (bf16)
                + w_bufs * tn * 4            # bias     (f32)
                + 2 * tm * tn * out_bytes)   # out tile (double-buffered)

    m_cap = max(min(_round_up(M, 16), _round_up(tm_cap, 16)), 16)

    def pick_tm(tn, w_bufs):
        for t in (512, 256, 128, 64, 32, 16):
            if t > m_cap and t != 16:
                continue
            if vmem_bytes(t, tn, w_bufs) <= vmem_budget_bytes:
                return t
        return None

    tm = pick_tm(Ep, 1)
    if tm is not None:
        tn, w_bufs = Ep, 1                   # weight fully resident, 1-D grid
    else:
        # Huge E: fall back to an E split (weight re-streamed along M).
        # TODO(synk): add an E-outer / M-inner ordering if this path matters.
        tn = next(t for t in (1024, 512, 256, 128) if Ep % t == 0)
        w_bufs = 2
        tm = pick_tm(tn, 2) or 16

    Mp = _round_up(M, tm)

    # Zero padding (M to tile, K and E to 128 multiples) — mathematically
    # exact, and applied to the already-bf16 patch matrix so it fuses with
    # the patchify transpose.
    patches_p = jnp.pad(patches, ((0, Mp - M), (0, Kp - K)))
    w_p = jnp.pad(w_mat, ((0, Kp - K), (0, Ep - E)))
    b_p = jnp.pad(b_row, ((0, 0), (0, Ep - E)))

    vmem_limit = min(max(vmem_bytes(tm, tn, w_bufs) + (4 << 20), 32 << 20),
                     64 << 20)

    if w_bufs == 1:
        # Weight-resident path: 1-D grid over M; weight/bias block indices are
        # grid-constant, fetched exactly once, single-buffered.
        grid = (Mp // tm,)
        in_specs = [
            pl.BlockSpec((tm, Kp), lambda i: (i, 0)),
            pl.BlockSpec((Kp, Ep), lambda i: (0, 0),
                         pipeline_mode=pl.Buffered(1)),
            pl.BlockSpec((1, Ep), lambda i: (0, 0),
                         pipeline_mode=pl.Buffered(1)),
        ]
        out_specs = pl.BlockSpec((tm, Ep), lambda i: (i, 0))
        dims = ("parallel",)
    else:
        grid = (Mp // tm, Ep // tn)
        in_specs = [
            pl.BlockSpec((tm, Kp), lambda i, j: (i, 0)),
            pl.BlockSpec((Kp, tn), lambda i, j: (0, j)),
            pl.BlockSpec((1, tn), lambda i, j: (0, j)),
        ]
        out_specs = pl.BlockSpec((tm, tn), lambda i, j: (i, j))
        dims = ("parallel", "parallel")

    out = pl.pallas_call(
        patch_embed_kernel,
        out_shape=jax.ShapeDtypeStruct((Mp, Ep), out_dtype),
        grid_spec=pltpu.PrefetchScalarGridSpec(
            num_scalar_prefetch=0,
            grid=grid,
            in_specs=in_specs,
            out_specs=out_specs,
        ),
        compiler_params=pltpu.CompilerParams(
            dimension_semantics=dims,
            vmem_limit_bytes=vmem_limit),
    )(patches_p, w_p, b_p)

    # Strip padding and restore (B, N, E).
    return out[:M, :E].reshape(B, N, E)


def reference_patch_embed(x, weight, bias, patch_size):
    """Pure-JAX reference: strided conv (NCHW), then flatten(2).transpose(1,2)."""
    y = jax.lax.conv_general_dilated(
        x, weight,
        window_strides=(patch_size, patch_size),
        padding="VALID",
        dimension_numbers=("NCHW", "OIHW", "NCHW"),
    )
    y = y + bias.reshape(1, -1, 1, 1)
    B, E, nh, nw = y.shape
    return y.reshape(B, E, nh * nw).transpose(0, 2, 1)


if __name__ == "__main__":
    # Small shapes consistent with the module: img=16, patch=4, in_ch=4, embed=32
    B, C, H, W = 2, 4, 16, 16
    p = 4
    E = 32

    key = jax.random.PRNGKey(0)
    kx, kw, kb = jax.random.split(key, 3)
    x = jax.random.normal(kx, (B, C, H, W), dtype=jnp.float32)
    # deterministic synthetic "conv" parameters (not a checkpoint load)
    weight = jax.random.normal(kw, (E, C, p, p), dtype=jnp.float32) * 0.02
    bias = jax.random.normal(kb, (E,), dtype=jnp.float32) * 0.01

    out = jax.block_until_ready(patch_embed(x, weight, bias, p))
    ref = jax.block_until_ready(reference_patch_embed(x, weight, bias, p))

    assert out.shape == (B, (H // p) * (W // p), E), out.shape
    # bf16 MXU operands (f32 accumulation) -> loosened tolerance vs f32 conv.
    assert jnp.allclose(out, ref, atol=1e-2, rtol=1e-2), float(
        jnp.max(jnp.abs(out - ref)))

    print("KERNEL_OK")
</pallas_src>

<mosaic_0001>
module attributes {stable_mosaic.version = 11 : i64} {
  func.func @patch_embed_kernel(%arg0: i32, %arg1: memref<32x128xbf16, #tpu.memory_space<vmem>>, %arg2: memref<128x128xbf16, #tpu.memory_space<vmem>>, %arg3: memref<1x128xf32, #tpu.memory_space<vmem>>, %arg4: memref<32x128xf32, #tpu.memory_space<vmem>>) attributes {dimension_semantics = [#tpu.dimension_semantics<parallel>], iteration_bounds = array<i64: 1>, scalar_prefetch = 0 : i64, scratch_operands = 0 : i64, tpu.core_type = #tpu.core_type<tc>, window_params = [{transform_indices = @transform_0, window_bounds = array<i64: 32, 128>}, {pipeline_mode = #tpu.pipeline_mode<synchronous>, transform_indices = @transform_1, window_bounds = array<i64: 128, 128>}, {pipeline_mode = #tpu.pipeline_mode<synchronous>, transform_indices = @transform_2, window_bounds = array<i64: 1, 128>}, {transform_indices = @transform_3, window_bounds = array<i64: 32, 128>}]} {
    %c0 = arith.constant 0 : index
    %c0_0 = arith.constant 0 : index
    %0 = vector.load %arg1[%c0, %c0_0] : memref<32x128xbf16, #tpu.memory_space<vmem>>, vector<32x128xbf16>
    %c0_1 = arith.constant 0 : index
    %c0_2 = arith.constant 0 : index
    %1 = vector.load %arg2[%c0_1, %c0_2] : memref<128x128xbf16, #tpu.memory_space<vmem>>, vector<128x128xbf16>
    %cst = arith.constant dense<0.000000e+00> : vector<32x128xf32>
    %2 = tpu.matmul %0, %1, %cst {dimension_numbers = #tpu.dot_dimension_numbers<[1], [0], [0], [1], [0, 0, 1, 1], [], []>} : vector<32x128xbf16>, vector<128x128xbf16>, vector<32x128xf32> -> vector<32x128xf32>
    %c0_3 = arith.constant 0 : index
    %c0_4 = arith.constant 0 : index
    %3 = vector.load %arg3[%c0_3, %c0_4] : memref<1x128xf32, #tpu.memory_space<vmem>>, vector<1x128xf32>
    %4 = vector.broadcast %3 : vector<1x128xf32> to vector<32x128xf32>
    %5 = arith.addf %2, %4 : vector<32x128xf32>
    %c0_5 = arith.constant 0 : index
    %c0_6 = arith.constant 0 : index
    %6 = vector.load %arg4[%c0_5, %c0_6] : memref<32x128xf32, #tpu.memory_space<vmem>>, vector<32x128xf32>
    tpu.vector_store %arg4[%c0_5, %c0_6], %5 {strides = array<i32>} : memref<32x128xf32, #tpu.memory_space<vmem>>, vector<32x128xf32>,
    return
  }
  func.func @transform_0(%arg0: i32) -> (i32, i32) {
    %c0_i32 = arith.constant 0 : i32
    %c0_i32_0 = arith.constant 0 : i32
    return %arg0, %c0_i32 : i32, i32
  }
  func.func @transform_1(%arg0: i32) -> (i32, i32) {
    %c0_i32 = arith.constant 0 : i32
    %c0_i32_0 = arith.constant 0 : i32
    %c0_i32_1 = arith.constant 0 : i32
    return %c0_i32, %c0_i32_0 : i32, i32
  }
  func.func @transform_2(%arg0: i32) -> (i32, i32) {
    %c0_i32 = arith.constant 0 : i32
    %c0_i32_0 = arith.constant 0 : i32
    %c0_i32_1 = arith.constant 0 : i32
    return %c0_i32, %c0_i32_0 : i32, i32
  }
  func.func @transform_3(%arg0: i32) -> (i32, i32) {
    %c0_i32 = arith.constant 0 : i32
    %c0_i32_0 = arith.constant 0 : i32
    return %arg0, %c0_i32 : i32, i32
  }
}

</mosaic_0001>

<bundles_post_ra>
// kernel: tpu_custom_call.1
= control target key start
LH: loop header
LB: loop body
LE: loop exit
PB: predicated region body
PF: predicated region fallthrough
CT: control target
= control target key end

     0   :  { %8 = vsyncpa [#allocation3], 0  ;;  %s357_s0 = inlined_call_operand.hbm [shape: bf16[32,128], index: 0, kind: input, shape index: {}]   ;;  %s358_s1 = inlined_call_operand.hbm [shape: bf16[128,128], index: 1, kind: input, shape index: {}]   ;;  %s359_s2 = inlined_call_operand.vmem [shape: f32[1,128], index: 2, kind: input, shape index: {}]   ;;  %s360_s3 = inlined_call_operand.hbm [shape: f32[32,128], index: 3, kind: output, shape index: {}]  }
   0x1   :  { %9 = vsyncpa [#allocation6], 0 }
   0x2   :  { %10 = vsyncpa [#allocation4], 0  ;;  %s15_s14 = sshll.u32 %s357_s0, 4  ;;  %s318_s15 = smov [#allocation2]   ;;  %s16_s14 = int_to_ptr.hbm [resolvable:$true] %s15_s14 }
   0x3   :  { %s17_s16 = sshll.u32 %s318_s15, 4  ;;  %s28_s19 = sshll.u32 %s358_s1, 4  ;;  %s18_s16 = int_to_ptr.vmem [resolvable:$true] %s17_s16  ;;  %s29_s19 = int_to_ptr.hbm [resolvable:$true] %s28_s19 }
   0x4   :  { %s319_s20 = smov 64   ;;  %s320_s21 = smov 4  }
   0x5   :  { %23 = dma.hbm_to_vmem [thread:$0]  %s16_s14, 256, %s18_s16, [#allocation3], %s319_s20, %s319_s20, %s320_s21  }
   0x6   :  { %s321_s22 = smov [#allocation5]  }
   0x7   :  { %s30_s23 = sshll.u32 %s321_s22, 4  ;;  %s31_s23 = int_to_ptr.vmem [resolvable:$true] %s30_s23 }
   0x8   :  { %36 = dma.hbm_to_vmem [thread:$0]  %s29_s19, 1024, %s31_s23, [#allocation6], %s319_s20, %s319_s20, %s320_s21  }
   0x9   :  { %312 = dma.done.wait [#allocation3], 256  }
   0xa   :  { %313 = vsyncadd [#allocation3], 4294967040 }
   0xb   :  { %314 = dma.done.wait [#allocation6], 1024  }
   0xc   :  { %315 = vsyncadd [#allocation6], 4294966272  ;;  %v223_v0 = vld [vmem:[#allocation5 + $0x38] sm:$0xff]  ;;  %v222_v1 = vld [vmem:[#allocation5 + $0x30] sm:$0xff]  ;;  %s322_s24 = smov [#allocation7]   ;;  %s160_s28 = sshll.u32 %s360_s3, 4  ;;  %s161_s28 = int_to_ptr.hbm [resolvable:$true] %s160_s28 }
   0xd   :  { %131 = vmatpush.bf16.msra.mxu0 %v223_v0  ;;  %224 = vmatpush.bf16.msra.mxu1 %v223_v0  ;;  %v221_v2 = vld [vmem:[#allocation5 + $0x28] sm:$0xff]  ;;  %v220_v3 = vld [vmem:[#allocation5 + $0x20] sm:$0xff]  ;;  %v219_v4 = vld [vmem:[#allocation5 + $0x18] sm:$0xff]  ;;  %s158_s25 = sshll.u32 %s322_s24, 4  ;;  %s324_s29 = smov 8   ;;  %s159_s25 = int_to_ptr.vmem [resolvable:$true] %s158_s25 }
   0xe   :  { %v218_v5 = vld [vmem:[#allocation5 + $0x10] sm:$0xff]  ;;  %v217_v6 = vld [vmem:[#allocation5 + $0x8] sm:$0xff]  ;;  %v216_v7 = vld [vmem:[#allocation5] sm:$0xff] }
   0xf   :  { %v214_v8 = vld [vmem:[#allocation2] sm:$0xff]  ;;  %v215_v9 = vld [vmem:[#allocation2 + $0x8] sm:$0xff] }
  0x10   :  { %v239_v10 = vld [vmem:[%s359_s2] ss:$0 sm:$0xff]  ;;  %s323_s2 = smov 128  }
  0x11   :  { %132 = vmatpush.bf16.msra.mxu0 %v222_v1  ;;  %225 = vmatpush.bf16.msra.mxu1 %v222_v1 }
  0x15   :  { %133 = vmatpush.bf16.msra.mxu0 %v221_v2  ;;  %226 = vmatpush.bf16.msra.mxu1 %v221_v2 }
  0x19   :  { %134 = vmatpush.bf16.msra.mxu0 %v220_v3  ;;  %227 = vmatpush.bf16.msra.mxu1 %v220_v3 }
  0x1d   :  { %135 = vmatpush.bf16.msra.mxu0 %v219_v4  ;;  %228 = vmatpush.bf16.msra.mxu1 %v219_v4 }
  0x21   :  { %136 = vmatpush.bf16.msra.mxu0 %v218_v5  ;;  %229 = vmatpush.bf16.msra.mxu1 %v218_v5 }
  0x25   :  { %137 = vmatpush.bf16.msra.mxu0 %v217_v6  ;;  %230 = vmatpush.bf16.msra.mxu1 %v217_v6 }
  0x29   :  { %138 = vmatpush.bf16.msra.mxu0 %v216_v7  ;;  %231 = vmatpush.bf16.msra.mxu1 %v216_v7 }
  0x2c   :  { %139 = vmatmul.bf16.vlgmr.msra.gmra.mxu0 %v214_v8  ;;  %144 = vmatmul.bf16.vlgmr.msra.gmra.mxu1 %v215_v9 }
  0xa9   :  { %v140_v11 = vpop.f32.mrf.mxu0  ;;  %v145_v12 = vpop.f32.mrf.mxu1 }
  0xaa   :  { %v141_v13 = vadd.f32 %v239_v10, %v140_v11  ;;  %v146_v14 = vadd.f32 %v239_v10, %v145_v12 }
  0xac   :  { %150 = vst [vmem:[#allocation7] sm:$0xff] %v141_v13 }
  0xad   :  { %152 = vst [vmem:[#allocation7 + $0x10] sm:$0xff] %v146_v14 }
  0xb1   :  { %v142_v15 = vpop.f32.mrf.mxu0  ;;  %v147_v16 = vpop.f32.mrf.mxu1 }
  0xb2   :  { %v143_v17 = vadd.f32 %v239_v10, %v142_v15  ;;  %v148_v18 = vadd.f32 %v239_v10, %v147_v16 }
  0xb4   :  { %151 = vst [vmem:[#allocation7 + $0x8] sm:$0xff] %v143_v17 }
  0xb5   :  { %153 = vst [vmem:[#allocation7 + $0x18] sm:$0xff] %v148_v18 }
  0xb6   :  { %166 = dma.vmem_to_hbm [thread:$0]  %s159_s25, 512, %s161_s28, [#allocation4], %s323_s2, %s323_s2, %s324_s29  }
  0xb7   :  { %316 = dma.done.wait [#allocation4], 512  }
  0xb8   :  { %317 = vsyncadd [#allocation4], 4294966784 }
  0xb9   :  { %171 = vsyncpa [#allocation3], 1 }
  0xba   :  { %172 = vsyncpa [#allocation6], 1 }
  0xbb   :  { %173 = vsyncpa [#allocation4], 1 }

</bundles_post_ra>
